<compile_context>
chip_gen: v7x
topology: tpu7x:2x2x1
jax: 0.10.0
libtpu: 0.0.40
codegen_flags: <defaults>
</compile_context>

<pallas_src>
import functools
import math

import jax
import jax.numpy as jnp
from jax.experimental import pallas as pl
from jax.experimental.pallas import tpu as pltpu


_LANE = 128
# Conservative per-generation-safe scratch budget for (table + double-buffered
# output block): fits v5e's 16 MiB default scoped VMEM, half of v6e/v7x's 32 MiB.
_VMEM_BUDGET_BYTES = 12 << 20
# Explicit scoped-VMEM limit (v5e default is only 16 MiB; 32 MiB is safe on all
# generations incl. v7x's 64 MiB physical VMEM).
_VMEM_LIMIT_BYTES = 32 << 20


def _round_up(x, m):
    return ((x + m - 1) // m) * m


def _choose_block_b(batch, row_bytes, avail_bytes):
    """Rows per grid step: as big as the VMEM budget allows, but keep >= 2 grid
    steps when the batch allows so v7x's two TensorCores both get work."""
    max_by_vmem = max(int(avail_bytes // (2 * row_bytes)), 1)   # double-buffered out block
    target = max(int(pl.cdiv(batch, 2)), 1)
    b = max(min(max_by_vmem, target), 1)
    return max(_round_up(b, 8), 8)                               # sublane-aligned rows


def _row_loop(block_b, row_fn):
    """Per-row loop over the batch block."""
    if block_b <= 32:
        # Short fixed trip count: full static unroll (LLO scheduler visibility).
        for i in range(block_b):
            row_fn(i)
    else:
        # Large blocks: bound vreg live ranges with a real loop, small unroll.
        def body(i, carry):
            row_fn(i)
            return carry
        jax.lax.fori_loop(0, block_b, body, 0, unroll=8)


def _windows_gather_kernel(idx_ref, win_ref, o_ref, *, cycle_len, block_b):
    """Lane-dense path.

    idx_ref : (batch_pad,) int32 in SMEM (scalar-prefetched)
    win_ref : (cycle_len, length*channel padded to 128) windows table, VMEM-resident
    o_ref   : (block_b, length*channel padded to 128) output block
    """
    base = pl.program_id(0) * block_b

    def row(i):
        # Scalar index math from SMEM; floor-mod matches torch `%` for ints.
        start = idx_ref[base + i] % cycle_len
        # Row `start` already holds the fully unrolled cyclic window
        # data[(start + l) % cycle_len, :] flattened — a single lane-dense row
        # copy; the block's HBM writeback is one contiguous DMA.
        o_ref[i] = win_ref[start]

    _row_loop(block_b, row)


def _tiled_slice_kernel(idx_ref, tiled_ref, o_ref, *, cycle_len, length, block_b):
    """Fallback path (windows table too big for VMEM): contiguous dynamic slice
    of a pre-tiled cycle table.  Stores stay lane-masked when channel < 128;
    keep/pad channel to a multiple of 128 in production to avoid that."""
    base = pl.program_id(0) * block_b

    def row(i):
        start = idx_ref[base + i] % cycle_len
        o_ref[i] = tiled_ref[pl.ds(start, length), :]

    _row_loop(block_b, row)


def recurrent_cycle_forward(index, data, length, *, vmem_budget_bytes=_VMEM_BUDGET_BYTES):
    """index: (B,) int; data: (cycle_len, C); returns (B, length, C).

    out[b, l, :] = data[(index[b] + l) % cycle_len, :]
    """
    cycle_len, channel = data.shape
    batch = int(index.shape[0])
    itemsize = jnp.dtype(data.dtype).itemsize

    # TODO(synk): int64 `index` values outside int32 range would be truncated here.
    idx = index.astype(jnp.int32)

    # ---- choose path + block size from a VMEM budget -------------------------
    lc = length * channel
    lc_pad = _round_up(lc, _LANE)
    win_bytes = cycle_len * lc_pad * itemsize
    # Use the lane-dense windows table only when it leaves >= half the budget
    # for the output blocks (table conservatively counted as double-buffered).
    use_windows = 2 * win_bytes <= vmem_budget_bytes // 2

    if use_windows:
        table_bytes = 2 * win_bytes
        row_bytes = lc_pad * itemsize
    else:
        n_copies = math.ceil((cycle_len + length) / cycle_len)
        table_bytes = 2 * n_copies * cycle_len * _round_up(channel, _LANE) * itemsize
        row_bytes = length * _round_up(channel, _LANE) * itemsize

    avail = max(vmem_budget_bytes - table_bytes, 2 * row_bytes)
    block_b = _choose_block_b(batch, row_bytes, avail)
    batch_pad = _round_up(batch, block_b)
    grid = (batch_pad // block_b,)

    if batch_pad != batch:
        idx = jnp.pad(idx, (0, batch_pad - batch))

    compiler_params = pltpu.CompilerParams(
        # Batch blocks are independent.  NOTE(v7x): _choose_block_b keeps the
        # grid at >= 2 steps whenever batch > block_b so both TensorCores can
        # get work; if plain PARALLEL does not shard on a given v7x build,
        # switch to pltpu.CORE_PARALLEL / a core_map over a leading size-2 axis.
        dimension_semantics=(pltpu.PARALLEL,),
        vmem_limit_bytes=_VMEM_LIMIT_BYTES,
    )

    if use_windows:
        # Precompute the lane-dense windows table in XLA (wrapper side).
        rows = (jnp.arange(cycle_len)[:, None] + jnp.arange(length)[None, :]) % cycle_len
        win = data[rows].reshape(cycle_len, lc)               # (cycle_len, L*C)
        if lc_pad != lc:
            win = jnp.pad(win, ((0, 0), (0, lc_pad - lc)))    # pad lanes to 128 multiple

        kernel = functools.partial(
            _windows_gather_kernel, cycle_len=cycle_len, block_b=block_b)

        out = pl.pallas_call(
            kernel,
            out_shape=jax.ShapeDtypeStruct((batch_pad, lc_pad), data.dtype),
            grid_spec=pltpu.PrefetchScalarGridSpec(
                num_scalar_prefetch=1,                        # `index` lands in SMEM
                grid=grid,
                in_specs=[
                    # Grid-invariant block index -> table stays resident in VMEM,
                    # no per-step re-DMA.  (A pl.Buffered(1) pipeline_mode would
                    # shave the second buffer; its cost is already charged to the
                    # VMEM budget above, so the block sizing is safe either way.)
                    pl.BlockSpec((cycle_len, lc_pad), lambda b, idx_ref: (0, 0)),
                ],
                out_specs=pl.BlockSpec((block_b, lc_pad), lambda b, idx_ref: (b, 0)),
            ),
            compiler_params=compiler_params,
        )(idx, win)
        # Strip row/lane padding and restore (B, L, C) — wrapper-side, zero kernel cost.
        return out[:batch, :lc].reshape(batch, length, channel)

    # ---- fallback: pre-tiled cycle table + contiguous dynamic slice ----------
    n_copies = math.ceil((cycle_len + length) / cycle_len)
    tiled = jnp.tile(data, (n_copies, 1))                     # (n_copies*cycle_len, C)

    kernel = functools.partial(
        _tiled_slice_kernel, cycle_len=cycle_len, length=length, block_b=block_b)

    out = pl.pallas_call(
        kernel,
        out_shape=jax.ShapeDtypeStruct((batch_pad, length, channel), data.dtype),
        grid_spec=pltpu.PrefetchScalarGridSpec(
            num_scalar_prefetch=1,
            grid=grid,
            in_specs=[pl.BlockSpec(tiled.shape, lambda b, idx_ref: (0, 0))],
            out_specs=pl.BlockSpec((block_b, length, channel),
                                   lambda b, idx_ref: (b, 0, 0)),
        ),
        compiler_params=compiler_params,
    )(idx, tiled)
    return out[:batch]


if __name__ == "__main__":
    key = jax.random.PRNGKey(0)
    k_data, k_idx = jax.random.split(key)

    cycle_len = 16
    channel_size = 32
    batch = 16          # -> 2 grid steps of 8 rows (splittable parallel axis for v7x)
    length = 24         # > cycle_len so wraparound is exercised; L*C = 768 = 6*128

    # torch init is zeros; use random values so the gather is observable.
    data = jax.random.normal(k_data, (cycle_len, channel_size), dtype=jnp.float32)
    index = jax.random.randint(k_idx, (batch,), 0, cycle_len, dtype=jnp.int32)

    out = recurrent_cycle_forward(index, data, length)
    out = jax.block_until_ready(out)

    # Pure-JAX reference for validation.
    gather_index = (index[:, None] + jnp.arange(length)[None, :]) % cycle_len
    ref = data[gather_index]

    assert out.shape == (batch, length, channel_size), out.shape
    assert jnp.array_equal(out, ref), "mismatch vs reference gather"

    print("KERNEL_OK")
</pallas_src>

<mosaic_0001>
module attributes {stable_mosaic.version = 11 : i64} {
  func.func @_windows_gather_kernel(%arg0: i32, %arg1: memref<16xi32, #tpu.memory_space<smem>>, %arg2: memref<16x768xf32, #tpu.memory_space<vmem>>, %arg3: memref<8x768xf32, #tpu.memory_space<vmem>>) attributes {dimension_semantics = [#tpu.dimension_semantics<parallel>], iteration_bounds = array<i64: 2>, scalar_prefetch = 1 : i64, scratch_operands = 0 : i64, tpu.core_type = #tpu.core_type<tc>, window_params = [{pipeline_mode = #tpu.pipeline_mode<synchronous>, transform_indices = @transform_0, window_bounds = array<i64: 16, 768>}, {transform_indices = @transform_1, window_bounds = array<i64: 8, 768>}]} {
    %c8_i32 = arith.constant 8 : i32
    %0 = arith.muli %arg0, %c8_i32 : i32
    %c0_i32 = arith.constant 0 : i32
    %1 = arith.addi %0, %c0_i32 : i32
    %2 = arith.index_cast %1 : i32 to index
    %3 = memref.load %arg1[%2] : memref<16xi32, #tpu.memory_space<smem>>
    %c16_i32 = arith.constant 16 : i32
    %c0_i32_0 = arith.constant 0 : i32
    %4 = arith.cmpi eq, %c16_i32, %c0_i32_0 : i32
    %c1_i32 = arith.constant 1 : i32
    %5 = arith.select %4, %c1_i32, %c16_i32 : i32
    %6 = arith.remsi %3, %5 : i32
    %c0_i32_1 = arith.constant 0 : i32
    %7 = arith.cmpi ne, %6, %c0_i32_1 : i32
    %c0_i32_2 = arith.constant 0 : i32
    %8 = arith.cmpi slt, %6, %c0_i32_2 : i32
    %c0_i32_3 = arith.constant 0 : i32
    %9 = arith.cmpi slt, %5, %c0_i32_3 : i32
    %10 = arith.xori %8, %9 : i1
    %11 = arith.andi %10, %7 : i1
    %12 = arith.addi %6, %5 : i32
    %13 = arith.select %11, %12, %6 : i32
    %14 = arith.index_cast %13 : i32 to index
    %c0 = arith.constant 0 : index
    %15 = vector.load %arg2[%14, %c0] : memref<16x768xf32, #tpu.memory_space<vmem>>, vector<1x768xf32>
    %16 = vector.shape_cast %15 : vector<1x768xf32> to vector<768xf32>
    %c0_4 = arith.constant 0 : index
    %c0_5 = arith.constant 0 : index
    %17 = vector.load %arg3[%c0_4, %c0_5] : memref<8x768xf32, #tpu.memory_space<vmem>>, vector<1x768xf32>
    %18 = vector.shape_cast %17 : vector<1x768xf32> to vector<768xf32>
    %19 = vector.shape_cast %16 : vector<768xf32> to vector<1x768xf32>
    tpu.vector_store %arg3[%c0_4, %c0_5], %19 {strides = array<i32>} : memref<8x768xf32, #tpu.memory_space<vmem>>, vector<1x768xf32>,
    %c1_i32_6 = arith.constant 1 : i32
    %20 = arith.addi %0, %c1_i32_6 : i32
    %21 = arith.index_cast %20 : i32 to index
    %22 = memref.load %arg1[%21] : memref<16xi32, #tpu.memory_space<smem>>
    %c16_i32_7 = arith.constant 16 : i32
    %c0_i32_8 = arith.constant 0 : i32
    %23 = arith.cmpi eq, %c16_i32_7, %c0_i32_8 : i32
    %c1_i32_9 = arith.constant 1 : i32
    %24 = arith.select %23, %c1_i32_9, %c16_i32_7 : i32
    %25 = arith.remsi %22, %24 : i32
    %c0_i32_10 = arith.constant 0 : i32
    %26 = arith.cmpi ne, %25, %c0_i32_10 : i32
    %c0_i32_11 = arith.constant 0 : i32
    %27 = arith.cmpi slt, %25, %c0_i32_11 : i32
    %c0_i32_12 = arith.constant 0 : i32
    %28 = arith.cmpi slt, %24, %c0_i32_12 : i32
    %29 = arith.xori %27, %28 : i1
    %30 = arith.andi %29, %26 : i1
    %31 = arith.addi %25, %24 : i32
    %32 = arith.select %30, %31, %25 : i32
    %33 = arith.index_cast %32 : i32 to index
    %c0_13 = arith.constant 0 : index
    %34 = vector.load %arg2[%33, %c0_13] : memref<16x768xf32, #tpu.memory_space<vmem>>, vector<1x768xf32>
    %35 = vector.shape_cast %34 : vector<1x768xf32> to vector<768xf32>
    %c1 = arith.constant 1 : index
    %c0_14 = arith.constant 0 : index
    %36 = vector.load %arg3[%c1, %c0_14] : memref<8x768xf32, #tpu.memory_space<vmem>>, vector<1x768xf32>
    %37 = vector.shape_cast %36 : vector<1x768xf32> to vector<768xf32>
    %38 = vector.shape_cast %35 : vector<768xf32> to vector<1x768xf32>
    tpu.vector_store %arg3[%c1, %c0_14], %38 {strides = array<i32>} : memref<8x768xf32, #tpu.memory_space<vmem>>, vector<1x768xf32>,
    %c2_i32 = arith.constant 2 : i32
    %39 = arith.addi %0, %c2_i32 : i32
    %40 = arith.index_cast %39 : i32 to index
    %41 = memref.load %arg1[%40] : memref<16xi32, #tpu.memory_space<smem>>
    %c16_i32_15 = arith.constant 16 : i32
    %c0_i32_16 = arith.constant 0 : i32
    %42 = arith.cmpi eq, %c16_i32_15, %c0_i32_16 : i32
    %c1_i32_17 = arith.constant 1 : i32
    %43 = arith.select %42, %c1_i32_17, %c16_i32_15 : i32
    %44 = arith.remsi %41, %43 : i32
    %c0_i32_18 = arith.constant 0 : i32
    %45 = arith.cmpi ne, %44, %c0_i32_18 : i32
    %c0_i32_19 = arith.constant 0 : i32
    %46 = arith.cmpi slt, %44, %c0_i32_19 : i32
    %c0_i32_20 = arith.constant 0 : i32
    %47 = arith.cmpi slt, %43, %c0_i32_20 : i32
    %48 = arith.xori %46, %47 : i1
    %49 = arith.andi %48, %45 : i1
    %50 = arith.addi %44, %43 : i32
    %51 = arith.select %49, %50, %44 : i32
    %52 = arith.index_cast %51 : i32 to index
    %c0_21 = arith.constant 0 : index
    %53 = vector.load %arg2[%52, %c0_21] : memref<16x768xf32, #tpu.memory_space<vmem>>, vector<1x768xf32>
    %54 = vector.shape_cast %53 : vector<1x768xf32> to vector<768xf32>
    %c2 = arith.constant 2 : index
    %c0_22 = arith.constant 0 : index
    %55 = vector.load %arg3[%c2, %c0_22] : memref<8x768xf32, #tpu.memory_space<vmem>>, vector<1x768xf32>
    %56 = vector.shape_cast %55 : vector<1x768xf32> to vector<768xf32>
    %57 = vector.shape_cast %54 : vector<768xf32> to vector<1x768xf32>
    tpu.vector_store %arg3[%c2, %c0_22], %57 {strides = array<i32>} : memref<8x768xf32, #tpu.memory_space<vmem>>, vector<1x768xf32>,
    %c3_i32 = arith.constant 3 : i32
    %58 = arith.addi %0, %c3_i32 : i32
    %59 = arith.index_cast %58 : i32 to index
    %60 = memref.load %arg1[%59] : memref<16xi32, #tpu.memory_space<smem>>
    %c16_i32_23 = arith.constant 16 : i32
    %c0_i32_24 = arith.constant 0 : i32
    %61 = arith.cmpi eq, %c16_i32_23, %c0_i32_24 : i32
    %c1_i32_25 = arith.constant 1 : i32
    %62 = arith.select %61, %c1_i32_25, %c16_i32_23 : i32
    %63 = arith.remsi %60, %62 : i32
    %c0_i32_26 = arith.constant 0 : i32
    %64 = arith.cmpi ne, %63, %c0_i32_26 : i32
    %c0_i32_27 = arith.constant 0 : i32
    %65 = arith.cmpi slt, %63, %c0_i32_27 : i32
    %c0_i32_28 = arith.constant 0 : i32
    %66 = arith.cmpi slt, %62, %c0_i32_28 : i32
    %67 = arith.xori %65, %66 : i1
    %68 = arith.andi %67, %64 : i1
    %69 = arith.addi %63, %62 : i32
    %70 = arith.select %68, %69, %63 : i32
    %71 = arith.index_cast %70 : i32 to index
    %c0_29 = arith.constant 0 : index
    %72 = vector.load %arg2[%71, %c0_29] : memref<16x768xf32, #tpu.memory_space<vmem>>, vector<1x768xf32>
    %73 = vector.shape_cast %72 : vector<1x768xf32> to vector<768xf32>
    %c3 = arith.constant 3 : index
    %c0_30 = arith.constant 0 : index
    %74 = vector.load %arg3[%c3, %c0_30] : memref<8x768xf32, #tpu.memory_space<vmem>>, vector<1x768xf32>
    %75 = vector.shape_cast %74 : vector<1x768xf32> to vector<768xf32>
    %76 = vector.shape_cast %73 : vector<768xf32> to vector<1x768xf32>
    tpu.vector_store %arg3[%c3, %c0_30], %76 {strides = array<i32>} : memref<8x768xf32, #tpu.memory_space<vmem>>, vector<1x768xf32>,
    %c4_i32 = arith.constant 4 : i32
    %77 = arith.addi %0, %c4_i32 : i32
    %78 = arith.index_cast %77 : i32 to index
    %79 = memref.load %arg1[%78] : memref<16xi32, #tpu.memory_space<smem>>
    %c16_i32_31 = arith.constant 16 : i32
    %c0_i32_32 = arith.constant 0 : i32
    %80 = arith.cmpi eq, %c16_i32_31, %c0_i32_32 : i32
    %c1_i32_33 = arith.constant 1 : i32
    %81 = arith.select %80, %c1_i32_33, %c16_i32_31 : i32
    %82 = arith.remsi %79, %81 : i32
    %c0_i32_34 = arith.constant 0 : i32
    %83 = arith.cmpi ne, %82, %c0_i32_34 : i32
    %c0_i32_35 = arith.constant 0 : i32
    %84 = arith.cmpi slt, %82, %c0_i32_35 : i32
    %c0_i32_36 = arith.constant 0 : i32
    %85 = arith.cmpi slt, %81, %c0_i32_36 : i32
    %86 = arith.xori %84, %85 : i1
    %87 = arith.andi %86, %83 : i1
    %88 = arith.addi %82, %81 : i32
    %89 = arith.select %87, %88, %82 : i32
    %90 = arith.index_cast %89 : i32 to index
    %c0_37 = arith.constant 0 : index
    %91 = vector.load %arg2[%90, %c0_37] : memref<16x768xf32, #tpu.memory_space<vmem>>, vector<1x768xf32>
    %92 = vector.shape_cast %91 : vector<1x768xf32> to vector<768xf32>
    %c4 = arith.constant 4 : index
    %c0_38 = arith.constant 0 : index
    %93 = vector.load %arg3[%c4, %c0_38] : memref<8x768xf32, #tpu.memory_space<vmem>>, vector<1x768xf32>
    %94 = vector.shape_cast %93 : vector<1x768xf32> to vector<768xf32>
    %95 = vector.shape_cast %92 : vector<768xf32> to vector<1x768xf32>
    tpu.vector_store %arg3[%c4, %c0_38], %95 {strides = array<i32>} : memref<8x768xf32, #tpu.memory_space<vmem>>, vector<1x768xf32>,
    %c5_i32 = arith.constant 5 : i32
    %96 = arith.addi %0, %c5_i32 : i32
    %97 = arith.index_cast %96 : i32 to index
    %98 = memref.load %arg1[%97] : memref<16xi32, #tpu.memory_space<smem>>
    %c16_i32_39 = arith.constant 16 : i32
    %c0_i32_40 = arith.constant 0 : i32
    %99 = arith.cmpi eq, %c16_i32_39, %c0_i32_40 : i32
    %c1_i32_41 = arith.constant 1 : i32
    %100 = arith.select %99, %c1_i32_41, %c16_i32_39 : i32
    %101 = arith.remsi %98, %100 : i32
    %c0_i32_42 = arith.constant 0 : i32
    %102 = arith.cmpi ne, %101, %c0_i32_42 : i32
    %c0_i32_43 = arith.constant 0 : i32
    %103 = arith.cmpi slt, %101, %c0_i32_43 : i32
    %c0_i32_44 = arith.constant 0 : i32
    %104 = arith.cmpi slt, %100, %c0_i32_44 : i32
    %105 = arith.xori %103, %104 : i1
    %106 = arith.andi %105, %102 : i1
    %107 = arith.addi %101, %100 : i32
    %108 = arith.select %106, %107, %101 : i32
    %109 = arith.index_cast %108 : i32 to index
    %c0_45 = arith.constant 0 : index
    %110 = vector.load %arg2[%109, %c0_45] : memref<16x768xf32, #tpu.memory_space<vmem>>, vector<1x768xf32>
    %111 = vector.shape_cast %110 : vector<1x768xf32> to vector<768xf32>
    %c5 = arith.constant 5 : index
    %c0_46 = arith.constant 0 : index
    %112 = vector.load %arg3[%c5, %c0_46] : memref<8x768xf32, #tpu.memory_space<vmem>>, vector<1x768xf32>
    %113 = vector.shape_cast %112 : vector<1x768xf32> to vector<768xf32>
    %114 = vector.shape_cast %111 : vector<768xf32> to vector<1x768xf32>
    tpu.vector_store %arg3[%c5, %c0_46], %114 {strides = array<i32>} : memref<8x768xf32, #tpu.memory_space<vmem>>, vector<1x768xf32>,
    %c6_i32 = arith.constant 6 : i32
    %115 = arith.addi %0, %c6_i32 : i32
    %116 = arith.index_cast %115 : i32 to index
    %117 = memref.load %arg1[%116] : memref<16xi32, #tpu.memory_space<smem>>
    %c16_i32_47 = arith.constant 16 : i32
    %c0_i32_48 = arith.constant 0 : i32
    %118 = arith.cmpi eq, %c16_i32_47, %c0_i32_48 : i32
    %c1_i32_49 = arith.constant 1 : i32
    %119 = arith.select %118, %c1_i32_49, %c16_i32_47 : i32
    %120 = arith.remsi %117, %119 : i32
    %c0_i32_50 = arith.constant 0 : i32
    %121 = arith.cmpi ne, %120, %c0_i32_50 : i32
    %c0_i32_51 = arith.constant 0 : i32
    %122 = arith.cmpi slt, %120, %c0_i32_51 : i32
    %c0_i32_52 = arith.constant 0 : i32
    %123 = arith.cmpi slt, %119, %c0_i32_52 : i32
    %124 = arith.xori %122, %123 : i1
    %125 = arith.andi %124, %121 : i1
    %126 = arith.addi %120, %119 : i32
    %127 = arith.select %125, %126, %120 : i32
    %128 = arith.index_cast %127 : i32 to index
    %c0_53 = arith.constant 0 : index
    %129 = vector.load %arg2[%128, %c0_53] : memref<16x768xf32, #tpu.memory_space<vmem>>, vector<1x768xf32>
    %130 = vector.shape_cast %129 : vector<1x768xf32> to vector<768xf32>
    %c6 = arith.constant 6 : index
    %c0_54 = arith.constant 0 : index
    %131 = vector.load %arg3[%c6, %c0_54] : memref<8x768xf32, #tpu.memory_space<vmem>>, vector<1x768xf32>
    %132 = vector.shape_cast %131 : vector<1x768xf32> to vector<768xf32>
    %133 = vector.shape_cast %130 : vector<768xf32> to vector<1x768xf32>
    tpu.vector_store %arg3[%c6, %c0_54], %133 {strides = array<i32>} : memref<8x768xf32, #tpu.memory_space<vmem>>, vector<1x768xf32>,
    %c7_i32 = arith.constant 7 : i32
    %134 = arith.addi %0, %c7_i32 : i32
    %135 = arith.index_cast %134 : i32 to index
    %136 = memref.load %arg1[%135] : memref<16xi32, #tpu.memory_space<smem>>
    %c16_i32_55 = arith.constant 16 : i32
    %c0_i32_56 = arith.constant 0 : i32
    %137 = arith.cmpi eq, %c16_i32_55, %c0_i32_56 : i32
    %c1_i32_57 = arith.constant 1 : i32
    %138 = arith.select %137, %c1_i32_57, %c16_i32_55 : i32
    %139 = arith.remsi %136, %138 : i32
    %c0_i32_58 = arith.constant 0 : i32
    %140 = arith.cmpi ne, %139, %c0_i32_58 : i32
    %c0_i32_59 = arith.constant 0 : i32
    %141 = arith.cmpi slt, %139, %c0_i32_59 : i32
    %c0_i32_60 = arith.constant 0 : i32
    %142 = arith.cmpi slt, %138, %c0_i32_60 : i32
    %143 = arith.xori %141, %142 : i1
    %144 = arith.andi %143, %140 : i1
    %145 = arith.addi %139, %138 : i32
    %146 = arith.select %144, %145, %139 : i32
    %147 = arith.index_cast %146 : i32 to index
    %c0_61 = arith.constant 0 : index
    %148 = vector.load %arg2[%147, %c0_61] : memref<16x768xf32, #tpu.memory_space<vmem>>, vector<1x768xf32>
    %149 = vector.shape_cast %148 : vector<1x768xf32> to vector<768xf32>
    %c7 = arith.constant 7 : index
    %c0_62 = arith.constant 0 : index
    %150 = vector.load %arg3[%c7, %c0_62] : memref<8x768xf32, #tpu.memory_space<vmem>>, vector<1x768xf32>
    %151 = vector.shape_cast %150 : vector<1x768xf32> to vector<768xf32>
    %152 = vector.shape_cast %149 : vector<768xf32> to vector<1x768xf32>
    tpu.vector_store %arg3[%c7, %c0_62], %152 {strides = array<i32>} : memref<8x768xf32, #tpu.memory_space<vmem>>, vector<1x768xf32>,
    return
  }
  func.func @transform_0(%arg0: i32, %arg1: memref<16xi32, #tpu.memory_space<smem>>) -> (i32, i32) {
    %c0_i32 = arith.constant 0 : i32
    %c0_i32_0 = arith.constant 0 : i32
    %c0_i32_1 = arith.constant 0 : i32
    return %c0_i32, %c0_i32_0 : i32, i32
  }
  func.func @transform_1(%arg0: i32, %arg1: memref<16xi32, #tpu.memory_space<smem>>) -> (i32, i32) {
    %c0_i32 = arith.constant 0 : i32
    %c0_i32_0 = arith.constant 0 : i32
    return %arg0, %c0_i32 : i32, i32
  }
}

</mosaic_0001>

<bundles_post_ra>
// kernel: tpu_custom_call.1
= control target key start
LH: loop header
LB: loop body
LE: loop exit
PB: predicated region body
PF: predicated region fallthrough
CT: control target
= control target key end

     0   :  { %s937_s0 = inlined_call_operand.hbm [shape: s32[16], index: 0, kind: input, shape index: {}]   ;;  %s938_s1 = inlined_call_operand.hbm [shape: f32[16,768], index: 1, kind: input, shape index: {}]   ;;  %s939_s2 = inlined_call_operand.hbm [shape: f32[16,768], index: 2, kind: output, shape index: {}]  }
   0x1   :  { %s550_s11 = scalar_lea.hbm %s937_s0, 16 }
   0x2   :  { %p551_p0 = scmp.ne.s32.totalorder %s937_s0, %s550_s11  ;;  %p554_p1 = scmp.lt.u32.totalorder %s550_s11, %s937_s0 }
   0x4   :  { %p556_p2 = pnand %p554_p1, %p551_p0 }
   0x6   :  { %559 = shalt.err (!%p556_p2)  }
   0x7   :  { %s658_s16 = smov [#allocation3]  }
   0x8   :  { %8 = dma.hbm_to_smem %s937_s0, 16, %s658_s16, [#allocation2] }
   0x9   :  { %632 = dma.done.wait [#allocation2], 16 }
   0xa   :  { %633 = vsyncadd [#allocation2], 4294967280 }
   0xb   :  { %10 = sfence }
   0xc   :  { %11 = vsyncpa [#allocation5], 0 }
   0xd   :  { %12 = vsyncpa [#allocation6], 0 }
   0xe   :  { %14 = vsyncpa [#allocation6 + $0x1], 0  ;;  %s690_s19 = smov 0   ;;  %s692_s20 = smov 0  }
   0xf   :  { %s694_s21 = smov 0   ;;  %s696_s22 = smov 0  }
  0x10 LB: > { %s711_s0 = sadd.s32 4294967295, %s656_s22   ;;  %s440_s23 = sadd.s32 4294967294, %s656_s22   ;;  %s656_s22 = sphi %s696_s22, %s960_s22   ;;  %s652_s21 = sphi %s694_s21, %s959_s21   ;;  %s648_s20 = sphi %s692_s20, %s958_s20   ;;  %s644_s19 = sphi %s690_s19, %s957_s19  }
  0x11   : > { %s715_s24 = sadd.s32 1, %s656_s22   ;;  %s48_s25 = sadd.s32 1, %s652_s21 }
  0x12   : > { %s45_s26 = ssub.s32 %s656_s22, %s715_s24  ;;  %p58_p3 = scmp.ne.s32.totalorder %s652_s21, %s648_s20 }
  0x13   : > { %p46_p4 = scmp.eq.s32.totalorder %s45_s26, 0  ;;  %p59_p5 = scmp.eq.s32.totalorder %s711_s0, 1 }
  0x14   : > { %p64_p6 = scmp.ne.s32.totalorder %s648_s20, %s644_s19  ;;  %p65_p7 = scmp.eq.s32.totalorder %s440_s23, 1 }
  0x15   : > { %s726_s27 = scalar_select %p46_p4, %s652_s21, %s48_s25  }
  0x16   : > { %p728_p8 = por %p59_p5, %p58_p3  ;;  %p732_p9 = por %p65_p7, %p64_p6 }
  0x17   : > { %p441_p10 = scmp.ge.s32.totalorder %s656_s22, 1  ;;  %p72_p11 = scmp.lt.s32.totalorder %s656_s22, 3 }
  0x18   : > { %s944_s28 = scalar_select %p728_p8, 1, 0 }
  0x19   : > { %s945_s29 = scalar_select %p732_p9, 1, 0 }
  0x1a   : > { %p940_p12 = scmp.eq.s32.totalorder %s711_s0, 0  ;;  %p739_p13 = pnand %p441_p10, %p72_p11 }
  0x1b   : > { %s659_s3 = smov [#allocation4]   ;;  %s560_s8 = scalar_lea.hbm %s938_s1, 1536 }
  0x1c   : > { %s946_s30 = scalar_select %p739_p13, 1, 0 }
  0x1d   : > { %s84_s4 = sshll.u32 %s659_s3, 4  ;;  %p503_p0 = pneg %p739_p13  ;;  %s85_s4 = int_to_ptr.vmem [resolvable:$true] %s84_s4 }
  0x1e   : > { %p561_p2 = scmp.ne.s32.totalorder %s938_s1, %s560_s8  ;;  %p567_p6 = scmp.lt.u32.totalorder %s560_s8, %s938_s1 }
  0x1f   : > { %p747_p1 = pnand %p940_p12, %p503_p0 }
  0x21   : > { %p562_p3 = pneg %p747_p1 }
  0x23   : > { %p563_p4 = pnand %p562_p3, %p561_p2 }
  0x25   : > { %p564_p5 = pneg %p563_p4 }
  0x27   : > { %p569_p7 = pnand %p567_p6, %p564_p5 }
  0x29   : > { %572 = shalt.err (!%p569_p7)
}
  0x2a   : > { %s573_s13 = scalar_lea.vmem %s85_s4, 1536  ;;  %p581_p12 = scmp.lt.s32.totalorder %s85_s4, %s85_s4 }
  0x2b   : > { %p574_p10 = scmp.ne.s32.totalorder %s85_s4, %s573_s13  ;;  %p582_p9 = scmp.lt.s32.totalorder %s573_s13, %s573_s13 }
  0x2d   : > { %p576_p11 = pnand %p574_p10, %p562_p3  ;;  %p583_p8 = por %p582_p9, %p581_p12 }
  0x2f   : > { %p577_p0 = pneg %p576_p11 }
  0x31   : > { %p584_p13 = pnand %p583_p8, %p577_p0 }
  0x33   : > { %587 = shalt.err (!%p584_p13)
}
  0x34   : > { %s660_s14 = smov 768   ;;  %s661_s15 = smov 48  }
  0x35   : > { %506 = dma.hbm_to_vmem [thread:$0]  (!%p747_p1), %s938_s1, 1536, %s85_s4, [#allocation5], %s660_s14, %s660_s14, %s661_s15  }
  0x36   : > { %p948_p2 = scmp.ne.s32.totalorder %s946_s30, 0 }
  0x37   : > { %p949_p4 = scmp.eq.s32.totalorder (!%p948_p2), %s711_s0, 0 }
  0x38   : > { %100 = sbr.rel (%p948_p2) target bundleno = 161 (0xa1), region = 24 }
  0x3f   : > { %635 = dma.done.wait (%p949_p4), [#allocation5], 1536   ;;  %p950_p3 = pmov %p949_p4 }
  0x40   : > { %s943_s18 = sand.u32 1, %s648_s20   ;;  %s775_s23 = sshll.u32 %s711_s0, 3  ;;  %v140_v0 = vlaneseq }
  0x41   : > { %637 = vsyncadd (%p950_p3), [#allocation5], 4294965760  ;;  %s779_s25 = smul.u32 48, %s943_s18  ;;  %s116_s26 = sld [smem:[#allocation3 + %s775_s23]] }
  0x42   : > { %s146_s30 = sadd.s32 1, %s775_s23  ;;  %s174_s4 = sadd.s32 2, %s775_s23  ;;  %vm803_vm0 = vcmp.lt.s32.totalorder %v140_v0, 768 }
  0x43   : > { %s783_s3 = sld [smem:[#allocation3 + %s146_s30]]  ;;  %s202_s5 = sadd.s32 3, %s775_s23 }
  0x44   : > { %s787_s6 = sld [smem:[#allocation3 + %s174_s4]]  ;;  %s230_s8 = sadd.s32 4, %s775_s23 }
  0x45   : > { %s789_s7 = sld [smem:[#allocation3 + %s202_s5]] }
  0x46   : > { %s793_s12 = sld [smem:[#allocation3 + %s230_s8]] }
  0x47   : > { %p117_p8 = scmp.lt.s32.totalorder %s116_s26, 0  ;;  %s118_s10 = ssub.s32 0, %s116_s26 }
  0x48   : > { %s446_s11 = smin.u32 %s118_s10, %s116_s26 }
  0x49   : > { %s120_s13 = sand.u32 15, %s446_s11   ;;  %p148_p9 = scmp.lt.s32.totalorder %s783_s3, 0 }
  0x4a   : > { %s121_s14 = ssub.s32 0, %s120_s13  ;;  %s149_s15 = ssub.s32 0, %s783_s3 }
  0x4b   : > { %s962_s14 = smov (!%p117_p8, %s121_s14), %s120_s13  ;;  %s450_s16 = smin.u32 %s149_s15, %s783_s3 }
  0x4c   : > { %p176_p12 = scmp.lt.s32.totalorder %s787_s6, 0  ;;  %p448_p13 = scmp.lt.s32.totalorder %s962_s14, 0 }
  0x4d   : > { %s127_s17 = sadd.s32 16, %s962_s14  ;;  %s151_s30 = sand.u32 15, %s450_s16  }
  0x4e   : > { %s177_s4 = ssub.s32 0, %s787_s6  ;;  %s964_s17 = smov (!%p448_p13, %s127_s17), %s962_s14 }
  0x4f   : > { %s152_s5 = ssub.s32 0, %s151_s30  ;;  %s456_s18 = smin.u32 %s177_s4, %s787_s6 }
  0x50   : > { %s129_s9 = sshra.s32 %s964_s17, 3  ;;  %s132_s26 = sand.u32 7, %s964_s17 }
  0x51   : > { %s449_s8 = smul.u32 48, %s129_s9  ;;  %s179_s10 = sand.u32 15, %s456_s18  }
  0x52   : > { %s966_s5 = smov (!%p148_p9, %s152_s5), %s151_s30  ;;  %s180_s13 = ssub.s32 0, %s179_s10 }
  0x53   : > { %s135_s11 = sadd.s32 %s449_s8, %s132_s26  ;;  %p452_p1 = scmp.lt.s32.totalorder %s966_s5, 0 }
  0x54   : > { %s136_s14 = scalar_lea.vmem [#allocation4], %s135_s11  ;;  %s968_s13 = smov (!%p176_p12, %s180_s13), %s179_s10 }
  0x55   : > { %v137_v2 = vld [vmem:[%s136_s14] ss:$8 sm:$0xf]  ;;  %s158_s15 = sadd.s32 16, %s966_s5  ;;  %p204_p5 = scmp.lt.s32.totalorder %s789_s7, 0 }
  0x56   : > { %v138_v3 = vld [vmem:[%s136_s14] ss:$8 sm:$0x30]  ;;  %s970_s15 = smov (!%p452_p1, %s158_s15), %s966_s5  ;;  %s811_s18 = scalar_lea.vmem [#allocation7], %s779_s25 }
  0x57   : > { %v139_v4 = vor.u32 %v138_v3, %v137_v2  ;;  %p458_p6 = scmp.lt.s32.totalorder %s968_s13, 0  ;;  %s186_s3 = sadd.s32 16, %s968_s13 }
  0x58   : > { %s160_s6 = sshra.s32 %s970_s15, 3  ;;  %s163_s9 = sand.u32 7, %s970_s15 }
  0x59   : > { %144 = vst.msk [vmem:[%s811_s18] ss:$8 sm:$0xf] %vm803_vm0, %v139_v4  ;;  %145 = vst.msk [vmem:[%s811_s18] ss:$8 sm:$0x30] %vm803_vm0, %v139_v4  ;;  %s972_s3 = smov (!%p458_p6, %s186_s3), %s968_s13 }
  0x5a   : > { %s453_s16 = smul.u32 48, %s160_s6  ;;  %s205_s17 = ssub.s32 0, %s789_s7 }
  0x5b   : > { %s462_s30 = smin.u32 %s205_s17, %s789_s7  ;;  %s188_s4 = sshra.s32 %s972_s3, 3 }
  0x5c   : > { %s166_s25 = sadd.s32 %s453_s16, %s163_s9  ;;  %s191_s26 = sand.u32 7, %s972_s3 }
  0x5d   : > { %s167_s5 = scalar_lea.vmem [#allocation4], %s166_s25  ;;  %s459_s8 = smul.u32 48, %s188_s4 }
  0x5e   : > { %v168_v5 = vld [vmem:[%s167_s5] ss:$8 sm:$0xf]  ;;  %s207_s10 = sand.u32 15, %s462_s30   ;;  %p232_p7 = scmp.lt.s32.totalorder %s793_s12, 0 }
  0x5f   : > { %v169_v6 = vld [vmem:[%s167_s5] ss:$8 sm:$0x30]  ;;  %s194_s11 = sadd.s32 %s459_s8, %s191_s26  ;;  %s208_s13 = ssub.s32 0, %s207_s10 }
  0x60   : > { %v170_v7 = vor.u32 %v169_v6, %v168_v5  ;;  %s233_s14 = ssub.s32 0, %s793_s12  ;;  %s195_s15 = scalar_lea.vmem [#allocation4], %s194_s11 }
  0x61   : > { %v196_v8 = vld [vmem:[%s195_s15] ss:$8 sm:$0xf]  ;;  %s974_s13 = smov (!%p204_p5, %s208_s13), %s207_s10  ;;  %s468_s3 = smin.u32 %s233_s14, %s793_s12 }
  0x62   : > { %454 = vst.msk [vmem:[%s811_s18 + $0x1] ss:$8 sm:$0xf] %vm803_vm0, %v170_v7  ;;  %455 = vst.msk [vmem:[%s811_s18 + $0x1] ss:$8 sm:$0x30] %vm803_vm0, %v170_v7 }
  0x63   : > { %v197_v9 = vld [vmem:[%s195_s15] ss:$8 sm:$0x30]  ;;  %s953_s6 = sadd.s32 5, %s775_s23  ;;  %p464_p10 = scmp.lt.s32.totalorder %s974_s13, 0 }
  0x64   : > { %v198_v10 = vor.u32 %v197_v9, %v196_v8  ;;  %s834_s9 = sld [smem:[#allocation3 + %s953_s6]]  ;;  %s214_s16 = sadd.s32 16, %s974_s13 }
  0x65   : > { %s235_s17 = sand.u32 15, %s468_s3   ;;  %s286_s7 = sadd.s32 6, %s775_s23 }
  0x66   : > { %460 = vst.msk [vmem:[%s811_s18 + $0x2] ss:$8 sm:$0xf] %vm803_vm0, %v198_v10  ;;  %461 = vst.msk [vmem:[%s811_s18 + $0x2] ss:$8 sm:$0x30] %vm803_vm0, %v198_v10  ;;  %s976_s16 = smov (!%p464_p10, %s214_s16), %s974_s13 }
  0x67   : > { %s236_s25 = ssub.s32 0, %s235_s17  ;;  %s843_s30 = sld [smem:[#allocation3 + %s286_s7]] }
  0x68   : > { %s216_s4 = sshra.s32 %s976_s16, 3  ;;  %s219_s5 = sand.u32 7, %s976_s16 }
  0x69   : > { %s465_s26 = smul.u32 48, %s216_s4  ;;  %s978_s25 = smov (!%p232_p7, %s236_s25), %s235_s17 }
  0x6a   : > { %p260_p11 = scmp.lt.s32.totalorder %s834_s9, 0  ;;  %s261_s10 = ssub.s32 0, %s834_s9 }
  0x6b   : > { %s222_s8 = sadd.s32 %s465_s26, %s219_s5  ;;  %p470_p0 = scmp.lt.s32.totalorder %s978_s25, 0 }
  0x6c   : > { %s223_s11 = scalar_lea.vmem [#allocation4], %s222_s8  ;;  %s474_s13 = smin.u32 %s261_s10, %s834_s9 }
  0x6d   : > { %v224_v11 = vld [vmem:[%s223_s11] ss:$8 sm:$0xf]  ;;  %s242_s14 = sadd.s32 16, %s978_s25  ;;  %s263_s15 = sand.u32 15, %s474_s13  }
  0x6e   : > { %v225_v12 = vld [vmem:[%s223_s11] ss:$8 sm:$0x30]  ;;  %s980_s14 = smov (!%p470_p0, %s242_s14), %s978_s25  ;;  %s264_s12 = ssub.s32 0, %s263_s15 }
  0x6f   : > { %v226_v13 = vor.u32 %v225_v12, %v224_v11  ;;  %p288_p2 = scmp.lt.s32.totalorder %s843_s30, 0  ;;  %s244_s3 = sshra.s32 %s980_s14, 3 }
  0x70   : > { %s247_s6 = sand.u32 7, %s980_s14  ;;  %s471_s16 = smul.u32 48, %s244_s3 }
  0x71   : > { %466 = vst.msk [vmem:[%s811_s18 + $0x3] ss:$8 sm:$0xf] %vm803_vm0, %v226_v13  ;;  %467 = vst.msk [vmem:[%s811_s18 + $0x3] ss:$8 sm:$0x30] %vm803_vm0, %v226_v13  ;;  %s982_s12 = smov (!%p260_p11, %s264_s12), %s263_s15 }
  0x72   : > { %s289_s17 = ssub.s32 0, %s843_s30  ;;  %s250_s7 = sadd.s32 %s471_s16, %s247_s6 }
  0x73   : > { %s480_s4 = smin.u32 %s289_s17, %s843_s30  ;;  %p476_p4 = scmp.lt.s32.totalorder %s982_s12, 0 }
  0x74   : > { %s251_s25 = scalar_lea.vmem [#allocation4], %s250_s7  ;;  %s270_s5 = sadd.s32 16, %s982_s12 }
  0x75   : > { %v252_v14 = vld [vmem:[%s251_s25] ss:$8 sm:$0xf]  ;;  %s291_s26 = sand.u32 15, %s480_s4   ;;  %s984_s5 = smov (!%p476_p4, %s270_s5), %s982_s12 }
  0x76   : > { %v253_v15 = vld [vmem:[%s251_s25] ss:$8 sm:$0x30]  ;;  %s292_s9 = ssub.s32 0, %s291_s26  ;;  %s314_s8 = sadd.s32 7, %s775_s23 }
  0x77   : > { %v254_v16 = vor.u32 %v253_v15, %v252_v14  ;;  %s272_s10 = sshra.s32 %s984_s5, 3  ;;  %s275_s11 = sand.u32 7, %s984_s5 }
  0x78   : > { %s477_s13 = smul.u32 48, %s272_s10  ;;  %s315_s14 = sld [smem:[#allocation3 + %s314_s8]] }
  0x79   : > { %472 = vst.msk [vmem:[%s811_s18 + $0x4] ss:$8 sm:$0xf] %vm803_vm0, %v254_v16  ;;  %473 = vst.msk [vmem:[%s811_s18 + $0x4] ss:$8 sm:$0x30] %vm803_vm0, %v254_v16  ;;  %s986_s9 = smov (!%p288_p2, %s292_s9), %s291_s26 }
  0x7a   : > { %s278_s15 = sadd.s32 %s477_s13, %s275_s11  ;;  %p482_p3 = scmp.lt.s32.totalorder %s986_s9, 0 }
  0x7b   : > { %s279_s3 = scalar_lea.vmem [#allocation4], %s278_s15  ;;  %s298_s12 = sadd.s32 16, %s986_s9 }
  0x7c   : > { %v280_v17 = vld [vmem:[%s279_s3] ss:$8 sm:$0xf]  ;;  %s988_s12 = smov (!%p482_p3, %s298_s12), %s986_s9  ;;  %s496_s11 = smul.u32 768, %s711_s0 }
  0x7d   : > { %v281_v18 = vld [vmem:[%s279_s3] ss:$8 sm:$0x30]  ;;  %s300_s30 = sshra.s32 %s988_s12, 3  ;;  %s303_s6 = sand.u32 7, %s988_s12 }
  0x7e   : > { %v282_v19 = vor.u32 %v281_v18, %v280_v17  ;;  %p316_p8 = scmp.lt.s32.totalorder %s315_s14, 0  ;;  %s317_s23 = ssub.s32 0, %s315_s14 }
  0x7f   : > { %s483_s16 = smul.u32 48, %s300_s30  ;;  %s486_s17 = smin.u32 %s317_s23, %s315_s14 }
  0x80   : > { %478 = vst.msk [vmem:[%s811_s18 + $0x5] ss:$8 sm:$0xf] %vm803_vm0, %v282_v19  ;;  %479 = vst.msk [vmem:[%s811_s18 + $0x5] ss:$8 sm:$0x30] %vm803_vm0, %v282_v19  ;;  %s887_s23 = scalar_lea.hbm %s939_s2, %s496_s11 }
  0x81   : > { %s319_s7 = sand.u32 15, %s486_s17   ;;  %s306_s4 = sadd.s32 %s483_s16, %s303_s6 }
  0x82   : > { %s320_s25 = ssub.s32 0, %s319_s7  ;;  %s307_s5 = scalar_lea.vmem [#allocation4], %s306_s4 }
  0x83   : > { %v308_v20 = vld [vmem:[%s307_s5] ss:$8 sm:$0xf]  ;;  %s990_s25 = smov (!%p316_p8, %s320_s25), %s319_s7  ;;  %s357_s14 = sshll.u32 %s811_s18, 4  ;;  %s889_s14 = int_to_ptr.vmem [resolvable:$true] %s357_s14 }
  0x84   : > { %v309_v21 = vld [vmem:[%s307_s5] ss:$8 sm:$0x30]  ;;  %p488_p9 = scmp.lt.s32.totalorder %s990_s25, 0  ;;  %s326_s26 = sadd.s32 16, %s990_s25 }
  0x85   : > { %v310_v22 = vor.u32 %v309_v21, %v308_v20  ;;  %s954_s0 = sand.u32 1, %s648_s20   ;;  %s588_s6 = scalar_lea.vmem %s889_s14, 768 }
  0x86   : > { %s992_s26 = smov (!%p488_p9, %s326_s26), %s990_s25  ;;  %s343_s30 = scalar_lea.sflag [#allocation6], %s954_s0 }
  0x87   : > { %484 = vst.msk [vmem:[%s811_s18 + $0x6] ss:$8 sm:$0xf] %vm803_vm0, %v310_v22  ;;  %485 = vst.msk [vmem:[%s811_s18 + $0x6] ss:$8 sm:$0x30] %vm803_vm0, %v310_v22  ;;  %p589_p12 = scmp.ne.s32.totalorder %s889_s14, %s588_s6 }
  0x88   : > { %s328_s9 = sshra.s32 %s992_s26, 3  ;;  %s331_s8 = sand.u32 7, %s992_s26 }
  0x89   : > { %s489_s10 = smul.u32 48, %s328_s9  ;;  %p955_p13 = scmp.ne.s32.totalorder %s944_s28, 0 }
  0x8a   : > { %s662_s16 = smov [#allocation7]  }
  0x8b   : > { %s334_s13 = sadd.s32 %s489_s10, %s331_s8  ;;  %p590_p1 = pnand %p589_p12, %p955_p13 }
  0x8c   : > { %s335_s15 = scalar_lea.vmem [#allocation4], %s334_s13  ;;  %s592_s17 = sshll.u32 %s662_s16, 4  ;;  %s593_s17 = int_to_ptr.vmem [resolvable:$false] %s592_s17 }
  0x8d   : > { %v336_v23 = vld [vmem:[%s335_s15] ss:$8 sm:$0xf]  ;;  %p591_p5 = pneg %p590_p1  ;;  %s594_s7 = scalar_lea.vmem %s593_s17, 1536 }
  0x8e   : > { %v337_v24 = vld [vmem:[%s335_s15] ss:$8 sm:$0x30]  ;;  %p595_p6 = scmp.lt.s32.totalorder %s889_s14, %s593_s17  ;;  %p596_p7 = scmp.lt.s32.totalorder %s594_s7, %s588_s6 }
  0x8f   : > { %v338_v25 = vor.u32 %v337_v24, %v336_v23 }
  0x90   : > { %p597_p10 = por %p596_p7, %p595_p6 }
  0x91   : > { %490 = vst.msk [vmem:[%s811_s18 + $0x7] ss:$8 sm:$0xf] %vm803_vm0, %v338_v25  ;;  %491 = vst.msk [vmem:[%s811_s18 + $0x7] ss:$8 sm:$0x30] %vm803_vm0, %v338_v25 }
  0x92   : > { %p598_p11 = pnand %p597_p10, %p591_p5 }
  0x94   : > { %601 = shalt.err (!%p598_p11)
}
  0x95   : > { %s602_s18 = scalar_lea.hbm %s887_s23, 768  ;;  %s606_s5 = scalar_lea.hbm %s939_s2, 1536 }
  0x96   : > { %p603_p0 = scmp.ne.s32.totalorder %s887_s23, %s602_s18  ;;  %p607_p3 = scmp.lt.u32.totalorder %s887_s23, %s939_s2 }
  0x97   : > { %p608_p8 = scmp.lt.u32.totalorder %s606_s5, %s602_s18  ;;  %p610_p12 = scmp.lt.u32.totalorder %s602_s18, %s887_s23 }
  0x98   : > { %p604_p2 = pnand %p603_p0, %p955_p13 }
  0x99   : > { %p609_p9 = por %p608_p8, %p607_p3 }
  0x9a   : > { %p605_p4 = pneg %p604_p2 }
  0x9b   : > { %p611_p1 = por %p610_p12, %p609_p9 }
  0x9d   : > { %p612_p5 = pnand %p611_p1, %p605_p4 }
  0x9f   : > { %615 = shalt.err (!%p612_p5)
}
  0xa0   : > { %501 = dma.vmem_to_hbm [thread:$0]  (%p955_p13), %s889_s14, 768, %s887_s23, %s343_s30  }
  0xa1 PF: > { %p513_p6 = scmp.ge.s32.totalorder %s656_s22, 2  ;;  %s369_s8 = sand.u32 1, %s644_s19  }
  0xa2   : > { %p956_p7 = scmp.ne.s32.totalorder %s945_s29, 0  ;;  %s370_s10 = scalar_lea.sflag [#allocation6], %s369_s8 }
  0xa4   : > { %p508_p10 = pnand %p513_p6, %p956_p7 }
  0xa6   : > { %639 = dma.done.wait (!%p508_p10), %s370_s10, 768  }
  0xa7   : > { %641 = vsyncadd (!%p508_p10), %s370_s10, 4294966528  ;;  %p17_p11 = scmp.ge.s32.totalorder %s715_s24, 4   ;;  %s957_s19 = smov %s648_s20 }
  0xa8   : > { %s958_s20 = smov %s652_s21  ;;  %s959_s21 = smov %s726_s27 }
  0xa9   : > { %s960_s22 = smov %s715_s24  ;;  %19 = sbr.rel (!%p17_p11) target bundleno = 16 (0x10), region = 76 }
  0xb0   :  { %375 = vsyncpa [#allocation5], 1 }
  0xb1   :  { %377 = vsyncpa [#allocation5 + $0x1], 1 }
  0xb2   :  { %378 = vsyncpa [#allocation6], 1 }
  0xb3   :  { %380 = vsyncpa [#allocation6 + $0x1], 1 }

</bundles_post_ra>
